<compile_context>
chip_gen: v7x
topology: tpu7x:2x2x1
jax: 0.10.0
libtpu: 0.0.40
codegen_flags: <defaults>
</compile_context>

<pallas_src>
import functools
import math

import jax
import jax.numpy as jnp
from jax.experimental import pallas as pl
from jax.experimental.pallas import tpu as pltpu  # noqa: F401  (TPU backend)

# Module hyper-parameters (from transformer_encoder.py)
d_k = d_v = 8
d_model = 32
n_heads = 4
LN_EPS = 1e-5            # nn.LayerNorm default
_HK = n_heads * d_k      # 32
_HV = n_heads * d_v      # 32
OUT_W = 128              # lane-dense packed output width (32 LN + 32 attn + 64 pad)


def mha_kernel(q_ref, k_ref, v_ref, bias_ref, wqkv_ref, bqkv_ref, wo_ref, bo_ref,
               out_ref, *, batch, seq):
    """Whole batch in one invocation.

    q_ref/k_ref/v_ref: (B*S, d_model)
    bias_ref         : (B*H*S, B*H*S) additive bias; -1e9 off the per-(b,h) diagonal
                       blocks, user mask (0 / -1e9) folded into the on-block entries.
    wqkv_ref         : (d_model, 3*HK)  [Wq/sqrt(d_k) | Wk | Wv]   (scale pre-folded)
    bqkv_ref         : (1, 3*HK)        [bq/sqrt(d_k) | bk | bv]
    wo_ref, bo_ref   : (HV, d_model), (1, d_model)
    out_ref          : (B*S, 128)  [:, :32]=LayerNorm(attn_out+residual), [:, 32:64]=self_attn
    """
    B, S = batch, seq
    BS = B * S

    xq = q_ref[...]                                        # (BS, d_model)
    xk = k_ref[...]
    xv = v_ref[...]

    # Single fused QKV projection for the whole batch: one MXU push.
    x = jnp.concatenate([xq, xk, xv], axis=0)              # (3*BS, d_model)
    r = jnp.dot(x, wqkv_ref[...], preferred_element_type=jnp.float32) + bqkv_ref[...]

    def heads_major(row0, col0, d):
        # (BS, H*d) block of r  ->  (B*H*S, d), rows ordered (b, h, s).
        # TODO(synk): could be a single pltpu.einshape relayout instead of slice+concat.
        return jnp.concatenate(
            [r[row0 + b * S: row0 + (b + 1) * S, col0 + h * d: col0 + (h + 1) * d]
             for b in range(B) for h in range(n_heads)], axis=0)

    qh = heads_major(0, 0, d_k)                 # (B*H*S, d_k), already scaled by 1/sqrt(d_k)
    kh = heads_major(BS, _HK, d_k)
    vh = heads_major(2 * BS, 2 * _HK, d_v)

    # Block-diagonal attention: one scores matmul + one context matmul for all (b, h).
    scores = jnp.einsum('qd,kd->qk', qh, kh,
                        preferred_element_type=jnp.float32)        # (BHS, BHS)
    scores = scores + bias_ref[...]             # off-block -1e9 + on-block user mask

    # Numerically-stable softmax; reciprocal on the EUP slot + one Newton step.
    m = jnp.max(scores, axis=-1, keepdims=True)
    e = jnp.exp(scores - m)
    denom = jnp.sum(e, axis=-1, keepdims=True)
    inv = pl.reciprocal(denom, approx=True)
    inv = inv * (2.0 - denom * inv)
    p = e * inv

    ctx = jnp.dot(p, vh, preferred_element_type=jnp.float32)       # (B*H*S, d_v)

    # (B*H*S, d_v) -> (B*S, H*d_v): torch's matmul(attn,V).transpose(1,2).reshape(B,S,H*d_v)
    self_attn = jnp.concatenate(
        [jnp.concatenate([ctx[(b * n_heads + h) * S: (b * n_heads + h + 1) * S, :]
                          for h in range(n_heads)], axis=1)
         for b in range(B)], axis=0)                               # (BS, HV)

    # Output projection + residual (residual = input_Q).
    proj = jnp.dot(self_attn, wo_ref[...],
                   preferred_element_type=jnp.float32) + bo_ref[...]
    y = proj + xq

    # LayerNorm(d_model): fresh nn.LayerNorm in the torch forward => gamma=1, beta=0.
    mean = jnp.mean(y, axis=-1, keepdims=True)
    var = jnp.mean((y - mean) ** 2, axis=-1, keepdims=True)
    ln = (y - mean) * jax.lax.rsqrt(var + LN_EPS)

    # Single lane-dense 128-wide store (one unmasked vst stream / dense writeback).
    pad = jnp.zeros((BS, OUT_W - d_model - _HV), dtype=jnp.float32)
    packed = jnp.concatenate([ln, self_attn, pad], axis=-1)        # (BS, 128)
    out_ref[...] = packed.astype(out_ref.dtype)


def prepare_params(params):
    """One-time constant folding (hoisted out of the per-call path)."""
    scale = 1.0 / math.sqrt(d_k)
    w_qkv = jnp.concatenate([params["wq"] * scale, params["wk"], params["wv"]], axis=1)
    b_qkv = jnp.concatenate([params["bq"] * scale, params["bk"], params["bv"]], axis=1)
    return dict(w_qkv=w_qkv, b_qkv=b_qkv, wo=params["wo"], bo=params["bo"])


@jax.jit
def multi_head_attention(input_Q, input_K, input_V, attn_mask, prep):
    """input_*: (B, S, d_model) f32; attn_mask: (B, S, S) bool (True = masked)."""
    B, S, _ = input_Q.shape
    BHS = B * n_heads * S

    # Per-call mask plumbing (tiny, fused under jit): additive bias that is -1e9 off the
    # per-(batch, head) diagonal blocks, with the user mask folded into on-block entries.
    mask_bias = jnp.where(attn_mask, jnp.float32(-1e9), jnp.float32(0.0))   # (B, S, S)
    same_b = jnp.eye(B, dtype=bool)[:, None, None, :, None, None]           # (B,1,1,B,1,1)
    same_h = jnp.eye(n_heads, dtype=bool)[None, :, None, None, :, None]     # (1,H,1,1,H,1)
    vals = mask_bias[:, None, :, None, None, :]                             # (B,1,S,1,1,S)
    bias = jnp.where(same_b & same_h, vals, jnp.float32(-1e9)).reshape(BHS, BHS)

    packed = pl.pallas_call(
        functools.partial(mha_kernel, batch=B, seq=S),
        out_shape=jax.ShapeDtypeStruct((B * S, OUT_W), jnp.float32),
    )(input_Q.reshape(B * S, d_model),
      input_K.reshape(B * S, d_model),
      input_V.reshape(B * S, d_model),
      bias, prep["w_qkv"], prep["b_qkv"], prep["wo"], prep["bo"])

    out_ln = packed[:, :d_model].reshape(B, S, d_model)
    self_attn = packed[:, d_model:d_model + _HV].reshape(B, S, _HV)
    return out_ln, self_attn


def reference(input_Q, input_K, input_V, attn_mask, params):
    """Pure-JAX reference mirroring the PyTorch forward."""
    B, S, _ = input_Q.shape
    q = (input_Q @ params["wq"] + params["bq"]).reshape(B, S, n_heads, d_k).transpose(0, 2, 1, 3)
    k = (input_K @ params["wk"] + params["bk"]).reshape(B, S, n_heads, d_k).transpose(0, 2, 1, 3)
    v = (input_V @ params["wv"] + params["bv"]).reshape(B, S, n_heads, d_v).transpose(0, 2, 1, 3)
    scores = jnp.einsum("bhqd,bhkd->bhqk", q, k) / math.sqrt(d_k)
    scores = jnp.where(attn_mask[:, None, :, :], -1e9, scores)
    attn = jax.nn.softmax(scores, axis=-1)
    ctx = jnp.einsum("bhqk,bhkd->bhqd", attn, v).transpose(0, 2, 1, 3).reshape(B, S, n_heads * d_v)
    out = ctx @ params["wo"] + params["bo"] + input_Q
    mean = out.mean(-1, keepdims=True)
    var = ((out - mean) ** 2).mean(-1, keepdims=True)
    return (out - mean) / jnp.sqrt(var + LN_EPS), ctx


if __name__ == "__main__":
    B, S = 2, 8
    key = jax.random.PRNGKey(0)
    ks = jax.random.split(key, 12)

    # Deterministic parameter init (stored as (in, out) so y = x @ W + b).
    def init_linear(kw, kb, fan_in, fan_out):
        bound = 1.0 / math.sqrt(fan_in)
        w = jax.random.uniform(kw, (fan_in, fan_out), jnp.float32, -bound, bound)
        b = jax.random.uniform(kb, (1, fan_out), jnp.float32, -bound, bound)
        return w, b

    wq, bq = init_linear(ks[0], ks[1], d_model, n_heads * d_k)
    wk, bk = init_linear(ks[2], ks[3], d_model, n_heads * d_k)
    wv, bv = init_linear(ks[4], ks[5], d_model, n_heads * d_v)
    wo, bo = init_linear(ks[6], ks[7], n_heads * d_v, d_model)
    params = dict(wq=wq, bq=bq, wk=wk, bk=bk, wv=wv, bv=bv, wo=wo, bo=bo)
    prep = prepare_params(params)          # one-time fused-weight fold (not per-call)

    input_Q = jax.random.normal(ks[8], (B, S, d_model), jnp.float32)
    input_K = jax.random.normal(ks[9], (B, S, d_model), jnp.float32)
    input_V = jax.random.normal(ks[10], (B, S, d_model), jnp.float32)
    # Causal-style mask (True = masked), matching torch's masked_fill_ semantics.
    attn_mask = jnp.broadcast_to(
        jnp.triu(jnp.ones((S, S), jnp.bool_), k=1), (B, S, S))

    out_ln, self_attn = multi_head_attention(input_Q, input_K, input_V, attn_mask, prep)
    jax.block_until_ready((out_ln, self_attn))

    ref_ln, ref_attn = reference(input_Q, input_K, input_V, attn_mask, params)
    assert jnp.allclose(out_ln, ref_ln, atol=5e-4, rtol=5e-4)
    assert jnp.allclose(self_attn, ref_attn, atol=5e-4, rtol=5e-4)

    print("KERNEL_OK")
</pallas_src>

<mosaic_0001>
module attributes {stable_mosaic.version = 11 : i64} {
  func.func @mha_kernel(%arg0: memref<16x32xf32, #tpu.memory_space<vmem>>, %arg1: memref<16x32xf32, #tpu.memory_space<vmem>>, %arg2: memref<16x32xf32, #tpu.memory_space<vmem>>, %arg3: memref<64x64xf32, #tpu.memory_space<vmem>>, %arg4: memref<32x96xf32, #tpu.memory_space<vmem>>, %arg5: memref<1x96xf32, #tpu.memory_space<vmem>>, %arg6: memref<32x32xf32, #tpu.memory_space<vmem>>, %arg7: memref<1x32xf32, #tpu.memory_space<vmem>>, %arg8: memref<16x128xf32, #tpu.memory_space<vmem>>) attributes {dimension_semantics = [], scalar_prefetch = 0 : i64, scratch_operands = 0 : i64, tpu.core_type = #tpu.core_type<tc>} {
    %c0 = arith.constant 0 : index
    %c0_0 = arith.constant 0 : index
    %0 = vector.load %arg0[%c0, %c0_0] : memref<16x32xf32, #tpu.memory_space<vmem>>, vector<16x32xf32>
    %c0_1 = arith.constant 0 : index
    %c0_2 = arith.constant 0 : index
    %1 = vector.load %arg1[%c0_1, %c0_2] : memref<16x32xf32, #tpu.memory_space<vmem>>, vector<16x32xf32>
    %c0_3 = arith.constant 0 : index
    %c0_4 = arith.constant 0 : index
    %2 = vector.load %arg2[%c0_3, %c0_4] : memref<16x32xf32, #tpu.memory_space<vmem>>, vector<16x32xf32>
    %3 = tpu.concatenate %0, %1, %2 in 0 : vector<16x32xf32>, vector<16x32xf32>, vector<16x32xf32> -> vector<48x32xf32>
    %c0_5 = arith.constant 0 : index
    %c0_6 = arith.constant 0 : index
    %4 = vector.load %arg4[%c0_5, %c0_6] : memref<32x96xf32, #tpu.memory_space<vmem>>, vector<32x96xf32>
    %cst = arith.constant dense<0.000000e+00> : vector<48x96xf32>
    %5 = tpu.matmul %3, %4, %cst {dimension_numbers = #tpu.dot_dimension_numbers<[1], [0], [0], [1], [0, 0, 1, 1], [], []>} : vector<48x32xf32>, vector<32x96xf32>, vector<48x96xf32> -> vector<48x96xf32>
    %c0_7 = arith.constant 0 : index
    %c0_8 = arith.constant 0 : index
    %6 = vector.load %arg5[%c0_7, %c0_8] : memref<1x96xf32, #tpu.memory_space<vmem>>, vector<1x96xf32>
    %7 = vector.broadcast %6 : vector<1x96xf32> to vector<48x96xf32>
    %8 = arith.addf %5, %7 : vector<48x96xf32>
    %9 = vector.extract_strided_slice %8 {offsets = [0, 0], sizes = [8, 8], strides = [1, 1]} : vector<48x96xf32> to vector<8x8xf32>
    %10 = vector.extract_strided_slice %8 {offsets = [0, 8], sizes = [8, 8], strides = [1, 1]} : vector<48x96xf32> to vector<8x8xf32>
    %11 = vector.extract_strided_slice %8 {offsets = [0, 16], sizes = [8, 8], strides = [1, 1]} : vector<48x96xf32> to vector<8x8xf32>
    %12 = vector.extract_strided_slice %8 {offsets = [0, 24], sizes = [8, 8], strides = [1, 1]} : vector<48x96xf32> to vector<8x8xf32>
    %13 = vector.extract_strided_slice %8 {offsets = [8, 0], sizes = [8, 8], strides = [1, 1]} : vector<48x96xf32> to vector<8x8xf32>
    %14 = vector.extract_strided_slice %8 {offsets = [8, 8], sizes = [8, 8], strides = [1, 1]} : vector<48x96xf32> to vector<8x8xf32>
    %15 = vector.extract_strided_slice %8 {offsets = [8, 16], sizes = [8, 8], strides = [1, 1]} : vector<48x96xf32> to vector<8x8xf32>
    %16 = vector.extract_strided_slice %8 {offsets = [8, 24], sizes = [8, 8], strides = [1, 1]} : vector<48x96xf32> to vector<8x8xf32>
    %17 = tpu.concatenate %9, %10, %11, %12, %13, %14, %15, %16 in 0 : vector<8x8xf32>, vector<8x8xf32>, vector<8x8xf32>, vector<8x8xf32>, vector<8x8xf32>, vector<8x8xf32>, vector<8x8xf32>, vector<8x8xf32> -> vector<64x8xf32>
    %18 = vector.extract_strided_slice %8 {offsets = [16, 32], sizes = [8, 8], strides = [1, 1]} : vector<48x96xf32> to vector<8x8xf32>
    %19 = vector.extract_strided_slice %8 {offsets = [16, 40], sizes = [8, 8], strides = [1, 1]} : vector<48x96xf32> to vector<8x8xf32>
    %20 = vector.extract_strided_slice %8 {offsets = [16, 48], sizes = [8, 8], strides = [1, 1]} : vector<48x96xf32> to vector<8x8xf32>
    %21 = vector.extract_strided_slice %8 {offsets = [16, 56], sizes = [8, 8], strides = [1, 1]} : vector<48x96xf32> to vector<8x8xf32>
    %22 = vector.extract_strided_slice %8 {offsets = [24, 32], sizes = [8, 8], strides = [1, 1]} : vector<48x96xf32> to vector<8x8xf32>
    %23 = vector.extract_strided_slice %8 {offsets = [24, 40], sizes = [8, 8], strides = [1, 1]} : vector<48x96xf32> to vector<8x8xf32>
    %24 = vector.extract_strided_slice %8 {offsets = [24, 48], sizes = [8, 8], strides = [1, 1]} : vector<48x96xf32> to vector<8x8xf32>
    %25 = vector.extract_strided_slice %8 {offsets = [24, 56], sizes = [8, 8], strides = [1, 1]} : vector<48x96xf32> to vector<8x8xf32>
    %26 = tpu.concatenate %18, %19, %20, %21, %22, %23, %24, %25 in 0 : vector<8x8xf32>, vector<8x8xf32>, vector<8x8xf32>, vector<8x8xf32>, vector<8x8xf32>, vector<8x8xf32>, vector<8x8xf32>, vector<8x8xf32> -> vector<64x8xf32>
    %27 = vector.extract_strided_slice %8 {offsets = [32, 64], sizes = [8, 8], strides = [1, 1]} : vector<48x96xf32> to vector<8x8xf32>
    %28 = vector.extract_strided_slice %8 {offsets = [32, 72], sizes = [8, 8], strides = [1, 1]} : vector<48x96xf32> to vector<8x8xf32>
    %29 = vector.extract_strided_slice %8 {offsets = [32, 80], sizes = [8, 8], strides = [1, 1]} : vector<48x96xf32> to vector<8x8xf32>
    %30 = vector.extract_strided_slice %8 {offsets = [32, 88], sizes = [8, 8], strides = [1, 1]} : vector<48x96xf32> to vector<8x8xf32>
    %31 = vector.extract_strided_slice %8 {offsets = [40, 64], sizes = [8, 8], strides = [1, 1]} : vector<48x96xf32> to vector<8x8xf32>
    %32 = vector.extract_strided_slice %8 {offsets = [40, 72], sizes = [8, 8], strides = [1, 1]} : vector<48x96xf32> to vector<8x8xf32>
    %33 = vector.extract_strided_slice %8 {offsets = [40, 80], sizes = [8, 8], strides = [1, 1]} : vector<48x96xf32> to vector<8x8xf32>
    %34 = vector.extract_strided_slice %8 {offsets = [40, 88], sizes = [8, 8], strides = [1, 1]} : vector<48x96xf32> to vector<8x8xf32>
    %35 = tpu.concatenate %27, %28, %29, %30, %31, %32, %33, %34 in 0 : vector<8x8xf32>, vector<8x8xf32>, vector<8x8xf32>, vector<8x8xf32>, vector<8x8xf32>, vector<8x8xf32>, vector<8x8xf32>, vector<8x8xf32> -> vector<64x8xf32>
    "tpu.trace_start"() <{level = 10 : i32, message = "qd,kd->qk"}> : () -> ()
    %cst_9 = arith.constant dense<0.000000e+00> : vector<64x64xf32>
    %36 = tpu.matmul %17, %26, %cst_9 {dimension_numbers = #tpu.dot_dimension_numbers<[1], [1], [0], [0], [0, 0, 1, 0], [], []>} : vector<64x8xf32>, vector<64x8xf32>, vector<64x64xf32> -> vector<64x64xf32>
    "tpu.trace_stop"() : () -> ()
    %c0_10 = arith.constant 0 : index
    %c0_11 = arith.constant 0 : index
    %37 = vector.load %arg3[%c0_10, %c0_11] : memref<64x64xf32, #tpu.memory_space<vmem>>, vector<64x64xf32>
    %38 = arith.addf %36, %37 : vector<64x64xf32>
    %cst_12 = arith.constant dense<0xFF800000> : vector<64xf32>
    %39 = vector.multi_reduction <maximumf>, %38, %cst_12 [1] : vector<64x64xf32> to vector<64xf32>
    %40 = vector.shape_cast %39 : vector<64xf32> to vector<64x1xf32>
    %41 = vector.broadcast %40 : vector<64x1xf32> to vector<64x64xf32>
    %42 = arith.subf %38, %41 : vector<64x64xf32>
    %43 = math.exp %42 : vector<64x64xf32>
    %cst_13 = arith.constant dense<0.000000e+00> : vector<64xf32>
    %44 = vector.multi_reduction <add>, %43, %cst_13 [1] : vector<64x64xf32> to vector<64xf32>
    %45 = vector.shape_cast %44 : vector<64xf32> to vector<64x1xf32>
    %46 = tpu.reciprocal %45 {approx = true} : vector<64x1xf32> -> vector<64x1xf32>
    %47 = arith.mulf %45, %46 : vector<64x1xf32>
    %cst_14 = arith.constant 2.000000e+00 : f32
    %48 = vector.broadcast %cst_14 : f32 to vector<64x1xf32>
    %49 = arith.subf %48, %47 : vector<64x1xf32>
    %50 = arith.mulf %46, %49 : vector<64x1xf32>
    %51 = vector.broadcast %50 : vector<64x1xf32> to vector<64x64xf32>
    %52 = arith.mulf %43, %51 : vector<64x64xf32>
    %cst_15 = arith.constant dense<0.000000e+00> : vector<64x8xf32>
    %53 = tpu.matmul %52, %35, %cst_15 {dimension_numbers = #tpu.dot_dimension_numbers<[1], [0], [0], [1], [0, 0, 1, 1], [], []>} : vector<64x64xf32>, vector<64x8xf32>, vector<64x8xf32> -> vector<64x8xf32>
    %54 = vector.extract_strided_slice %53 {offsets = [0, 0], sizes = [8, 8], strides = [1, 1]} : vector<64x8xf32> to vector<8x8xf32>
    %55 = vector.extract_strided_slice %53 {offsets = [8, 0], sizes = [8, 8], strides = [1, 1]} : vector<64x8xf32> to vector<8x8xf32>
    %56 = vector.extract_strided_slice %53 {offsets = [16, 0], sizes = [8, 8], strides = [1, 1]} : vector<64x8xf32> to vector<8x8xf32>
    %57 = vector.extract_strided_slice %53 {offsets = [24, 0], sizes = [8, 8], strides = [1, 1]} : vector<64x8xf32> to vector<8x8xf32>
    %58 = tpu.concatenate %54, %55, %56, %57 in 1 : vector<8x8xf32>, vector<8x8xf32>, vector<8x8xf32>, vector<8x8xf32> -> vector<8x32xf32>
    %59 = vector.extract_strided_slice %53 {offsets = [32, 0], sizes = [8, 8], strides = [1, 1]} : vector<64x8xf32> to vector<8x8xf32>
    %60 = vector.extract_strided_slice %53 {offsets = [40, 0], sizes = [8, 8], strides = [1, 1]} : vector<64x8xf32> to vector<8x8xf32>
    %61 = vector.extract_strided_slice %53 {offsets = [48, 0], sizes = [8, 8], strides = [1, 1]} : vector<64x8xf32> to vector<8x8xf32>
    %62 = vector.extract_strided_slice %53 {offsets = [56, 0], sizes = [8, 8], strides = [1, 1]} : vector<64x8xf32> to vector<8x8xf32>
    %63 = tpu.concatenate %59, %60, %61, %62 in 1 : vector<8x8xf32>, vector<8x8xf32>, vector<8x8xf32>, vector<8x8xf32> -> vector<8x32xf32>
    %64 = tpu.concatenate %58, %63 in 0 : vector<8x32xf32>, vector<8x32xf32> -> vector<16x32xf32>
    %c0_16 = arith.constant 0 : index
    %c0_17 = arith.constant 0 : index
    %65 = vector.load %arg6[%c0_16, %c0_17] : memref<32x32xf32, #tpu.memory_space<vmem>>, vector<32x32xf32>
    %cst_18 = arith.constant dense<0.000000e+00> : vector<16x32xf32>
    %66 = tpu.matmul %64, %65, %cst_18 {dimension_numbers = #tpu.dot_dimension_numbers<[1], [0], [0], [1], [0, 0, 1, 1], [], []>} : vector<16x32xf32>, vector<32x32xf32>, vector<16x32xf32> -> vector<16x32xf32>
    %c0_19 = arith.constant 0 : index
    %c0_20 = arith.constant 0 : index
    %67 = vector.load %arg7[%c0_19, %c0_20] : memref<1x32xf32, #tpu.memory_space<vmem>>, vector<1x32xf32>
    %68 = vector.broadcast %67 : vector<1x32xf32> to vector<16x32xf32>
    %69 = arith.addf %66, %68 : vector<16x32xf32>
    %70 = arith.addf %69, %0 : vector<16x32xf32>
    %cst_21 = arith.constant dense<0.000000e+00> : vector<16xf32>
    %71 = vector.multi_reduction <add>, %70, %cst_21 [1] : vector<16x32xf32> to vector<16xf32>
    %72 = vector.shape_cast %71 : vector<16xf32> to vector<16x1xf32>
    %cst_22 = arith.constant 3.200000e+01 : f32
    %73 = vector.broadcast %cst_22 : f32 to vector<16x1xf32>
    %74 = arith.divf %72, %73 : vector<16x1xf32>
    %75 = vector.broadcast %74 : vector<16x1xf32> to vector<16x32xf32>
    %76 = arith.subf %70, %75 : vector<16x32xf32>
    %77 = arith.mulf %76, %76 : vector<16x32xf32>
    %cst_23 = arith.constant dense<0.000000e+00> : vector<16xf32>
    %78 = vector.multi_reduction <add>, %77, %cst_23 [1] : vector<16x32xf32> to vector<16xf32>
    %79 = vector.shape_cast %78 : vector<16xf32> to vector<16x1xf32>
    %cst_24 = arith.constant 3.200000e+01 : f32
    %80 = vector.broadcast %cst_24 : f32 to vector<16x1xf32>
    %81 = arith.divf %79, %80 : vector<16x1xf32>
    %82 = vector.broadcast %74 : vector<16x1xf32> to vector<16x32xf32>
    %83 = arith.subf %70, %82 : vector<16x32xf32>
    %cst_25 = arith.constant 9.99999974E-6 : f32
    %84 = vector.broadcast %cst_25 : f32 to vector<16x1xf32>
    %85 = arith.addf %81, %84 : vector<16x1xf32>
    %86 = math.rsqrt %85 : vector<16x1xf32>
    %87 = vector.broadcast %86 : vector<16x1xf32> to vector<16x32xf32>
    %88 = arith.mulf %83, %87 : vector<16x32xf32>
    %cst_26 = arith.constant 0.000000e+00 : f32
    %89 = vector.broadcast %cst_26 : f32 to vector<16x64xf32>
    %90 = tpu.concatenate %88, %64, %89 in 1 : vector<16x32xf32>, vector<16x32xf32>, vector<16x64xf32> -> vector<16x128xf32>
    %c0_27 = arith.constant 0 : index
    %c0_28 = arith.constant 0 : index
    %91 = vector.load %arg8[%c0_27, %c0_28] : memref<16x128xf32, #tpu.memory_space<vmem>>, vector<16x128xf32>
    tpu.vector_store %arg8[%c0_27, %c0_28], %90 {strides = array<i32>} : memref<16x128xf32, #tpu.memory_space<vmem>>, vector<16x128xf32>,
    return
  }
}

</mosaic_0001>

<bundles_post_ra>
// kernel: multi_head_attention.1
= control target key start
LH: loop header
LB: loop body
LE: loop exit
PB: predicated region body
PF: predicated region fallthrough
CT: control target
= control target key end

     0   :  { %vm46_vm0 = vcmask 261120   ;;  %vm226_vm1 = vcmask 64512   ;;  %s1108_s25 = smov 112   ;;  %vm364_vm3 = vcmask 523264   ;;  %s1110_s19 = smov 64   ;;  %vm643_vm4 = vcmask 130048   ;;  %s1384_s4 = inlined_call_operand.vmem [shape: f32[32,96], index: 4, kind: input, shape index: {}]   ;;  %s1385_s0 = inlined_call_operand.vmem [shape: f32[16,32], index: 0, kind: input, shape index: {}]   ;;  %s1386_s1 = inlined_call_operand.vmem [shape: f32[16,32], index: 1, kind: input, shape index: {}]   ;;  %s1387_s2 = inlined_call_operand.vmem [shape: f32[16,32], index: 2, kind: input, shape index: {}]   ;;  %s1388_s5 = inlined_call_operand.vmem [shape: f32[1,96], index: 5, kind: input, shape index: {}]   ;;  %s1389_s3 = inlined_call_operand.vmem [shape: f32[64,64], index: 3, kind: input, shape index: {}]   ;;  %s1390_s6 = inlined_call_operand.vmem [shape: f32[32,32], index: 6, kind: input, shape index: {}]   ;;  %s1391_s7 = inlined_call_operand.vmem [shape: f32[1,32], index: 7, kind: input, shape index: {}]   ;;  %s1392_s8 = inlined_call_operand.vmem [shape: f32[16,128], index: 8, kind: output, shape index: {}]  }
   0x1   :  { %v35_v0 = vld [vmem:[%s1384_s4] sm:$0xff]  ;;  %v36_v1 = vld [vmem:[%s1384_s4 + $0x8] sm:$0xff]  ;;  %v37_v2 = vld [vmem:[%s1384_s4 + $0x10] sm:$0xff]  ;;  %vm645_vm5 = vcmask 195584   ;;  %s1114_s27 = smov 32  }
   0x2   :  { %v965_v3 = vpack.c.bf16 %v36_v1, %v35_v0  ;;  %v38_v4 = vld [vmem:[%s1384_s4 + $0x18] sm:$0xff]  ;;  %v1175_v5 = vld [vmem:[%s1385_s0] sm:$0xff]  ;;  %v1182_v7 = vld [vmem:[%s1385_s0 + $0x8] sm:$0xff] }
   0x3   :  { %v969_v6 = vpack.c.bf16 %v38_v4, %v37_v2  ;;  %889 = vmatprep.mubr.msk.f32.mxu0 %vm46_vm0, %v1175_v5  ;;  %v31_v8 = vld [vmem:[%s1386_s1] sm:$0xff]  ;;  %v32_v9 = vld [vmem:[%s1386_s1 + $0x8] sm:$0xff]  ;;  %s1106_s1 = smov 104   ;;  %vm1232_vm2 = vmpackc.low %vm226_vm1, %vm226_vm1 }
   0x4   :  { %966 = vmatprep.subr.bf16.mxu0 %v965_v3  ;;  %v33_v10 = vld [vmem:[%s1387_s2] sm:$0xff]  ;;  %v34_v11 = vld [vmem:[%s1387_s2 + $0x8] sm:$0xff]  ;;  %s1107_s2 = smov 120   ;;  %v205_v0 = vld [vmem:[%s1389_s3 + $0x18] sm:$0xff] }
   0x5   :  { %968 = vmatpush3.bf16.msra.mxu0 %v965_v3  ;;  %v799_v12 = vld [vmem:[%s1388_s5] ss:$0 sm:$0xff]  ;;  %s1109_s5 = smov 96   ;;  %v203_v58 = vld [vmem:[%s1389_s3 + $0x8] sm:$0xff] }
   0x6   :  { %970 = vmatprep.subr.bf16.mxu0 %v969_v6  ;;  %v202_v59 = vld [vmem:[%s1389_s3] sm:$0xff] }
   0x9   :  { %972 = vmatpush3.bf16.msra.mxu0 %v969_v6 }
   0xc   :  { %890 = vmatmul.mubr.msk.f32.vlgmr.msra.gmra.mrb[0].mxu0 %vm46_vm0, %v1182_v7 }
   0xd   :  { %892 = vmatprep.mubr.msk.f32.mxu0 %vm46_vm0, %v31_v8  ;;  %v204_v8 = vld [vmem:[%s1389_s3 + $0x10] sm:$0xff] }
  0x10   :  { %893 = vmatmul.mubr.msk.f32.gmra.mrb[2].mxu0 %vm46_vm0, %v32_v9  ;;  %v206_v9 = vld [vmem:[%s1389_s3 + $0x20] sm:$0xff] }
  0x11   :  { %895 = vmatprep.mubr.msk.f32.mxu0 %vm46_vm0, %v33_v10 }
  0x14   :  { %896 = vmatmul.mubr.msk.f32.gmra.mrb[4].mxu0 %vm46_vm0, %v34_v11 }
  0xdf   :  { %v891_v13 = vpop.f32.mrb[0].mxu0 }
  0xe0   :  { %v131_v14 = vpop.f32.mrb[1].mxu0  ;;  %v137_v30 = vadd.f32 %v891_v13, %v799_v12  ;;  %v207_v13 = vld [vmem:[%s1389_s3 + $0x28] sm:$0xff] }
  0xe1   :  { %v132_v15 = vadd.f32 %v799_v12, %v131_v14 }
  0xe3   :  { %v894_v16 = vpop.f32.mrb[2].mxu0  ;;  %914 = vmatprep.mubr.msk.f32.mxu1 %vm226_vm1, %v132_v15 }
  0xe4   :  { %v141_v17 = vpop.f32.mrb[3].mxu0  ;;  %v147_v19 = vadd.f32 %v894_v16, %v799_v12 }
  0xe5   :  { %v142_v18 = vadd.f32 %v799_v12, %v141_v17 }
  0xe7   :  { %179 = vrot.lane.b32.xlu1 %v142_v18, %s1106_s1  ;;  %175 = vrot.lane.b32.xlu0 %v142_v18, %s1107_s2  ;;  %v897_v31 = vpop.f32.mrb[4].mxu0 }
  0xe8   :  { %v151_v32 = vpop.f32.mrb[5].mxu0  ;;  %v1224_v34 = vadd.f32 %v897_v31, %v799_v12 }
  0xe9   :  { %v1218_v33 = vadd.f32 %v799_v12, %v151_v32 }
  0xeb   :  { %182 = vrot.lane.b32.xlu1 %v147_v19, %s1107_s2  ;;  %177 = vrot.lane.b32.xlu0 %v142_v18, %s1108_s25 }
  0xef   :  { %186 = vrot.lane.b32.xlu1 %v147_v19, %s1106_s1  ;;  %184 = vrot.lane.b32.xlu0 %v147_v19, %s1108_s25 }
 0x159   :  { %v180_v20 = vpop.permute.xlu1 %179  ;;  %v176_v21 = vpop.permute.xlu0 %175 }
 0x15a   :  { %v1030_v22 = vpack.i.bf16 %v176_v21, %v142_v18 }
 0x15c   :  { %1031 = vrot.lane.b32.xlu0 %v1030_v22, %s1109_s5 }
 0x15d   :  { %v183_v23 = vpop.permute.xlu1 %182  ;;  %v178_v24 = vpop.permute.xlu0 %177 }
 0x15e   :  { %v1040_v25 = vpack.i.bf16 %v183_v23, %v147_v19  ;;  %v1035_v26 = vpack.i.bf16 %v180_v20, %v178_v24  ;;  %v209_v20 = vld [vmem:[%s1389_s3 + $0x38] sm:$0xff] }
 0x160   :  { %1041 = vrot.lane.b32.xlu0 %v1040_v25, %s1109_s5  ;;  %1036 = vrot.lane.b32.xlu1 %v1035_v26, %s1109_s5  ;;  %v208_v25 = vld [vmem:[%s1389_s3 + $0x30] sm:$0xff] }
 0x161   :  { %v187_v27 = vpop.permute.xlu1 %186  ;;  %v185_v28 = vpop.permute.xlu0 %184 }
 0x162   :  { %v1045_v29 = vpack.i.bf16 %v187_v27, %v185_v28 }
 0x164   :  { %1046 = vrot.lane.b32.xlu1 %v1045_v29, %s1109_s5  ;;  %161 = vrot.lane.b32.xlu0 %v132_v15, %s1107_s2  ;;  %s1113_s5 = smov 16  }
 0x168   :  { %163 = vrot.lane.b32.xlu1 %v132_v15, %s1108_s25  ;;  %165 = vrot.lane.b32.xlu0 %v132_v15, %s1106_s1 }
 0x16c   :  { %168 = vrot.lane.b32.xlu1 %v137_v30, %s1107_s2  ;;  %170 = vrot.lane.b32.xlu0 %v137_v30, %s1108_s25 }
 0x170   :  { %172 = vrot.lane.b32.xlu1 %v137_v30, %s1106_s1  ;;  %191 = vrot.lane.b32.xlu0 %v1218_v33, %s1108_s25 }
 0x174   :  { %189 = vrot.lane.b32.xlu1 %v1218_v33, %s1107_s2 }
 0x178   :  { %193 = vrot.lane.b32.xlu1 %v1218_v33, %s1106_s1 }
 0x17c   :  { %196 = vrot.lane.b32.xlu1 %v1224_v34, %s1107_s2  ;;  %s1111_s2 = smov 8  }
 0x1ce   :  { %v1032_v35 = vpop.permute.xlu0 %1031 }
 0x1cf   :  { %v1034_v36 = vunpack.i.h.bf16 %v1032_v35  ;;  %v1033_v37 = vunpack.i.l.bf16 %v1032_v35 }
 0x1d1   :  { %v973_v39 = vpack.c.bf16 %v1034_v36, %v1033_v37 }
 0x1d2   :  { %v1037_v40 = vpop.permute.xlu1 %1036  ;;  %v1042_v43 = vpop.permute.xlu0 %1041 }
 0x1d3   :  { %v1039_v41 = vunpack.i.h.bf16 %v1037_v40  ;;  %v1038_v42 = vunpack.i.l.bf16 %v1037_v40  ;;  %975 = vmatprep.subr.msk.bf16.mxu1 %vm1232_vm2, %v973_v39  ;;  %v1044_v45 = vunpack.i.h.bf16 %v1042_v43  ;;  %v1043_v46 = vunpack.i.l.bf16 %v1042_v43 }
 0x1d4   :  { %978 = vmatpush3.bf16.xpose.msk.msra.mxu1 %vm1232_vm2, %v973_v39 }
 0x1d5   :  { %v979_v44 = vpack.c.bf16 %v1039_v41, %v1038_v42  ;;  %v985_v47 = vpack.c.bf16 %v1044_v45, %v1043_v46 }
 0x1d6   :  { %v1047_v48 = vpop.permute.xlu1 %1046  ;;  %v162_v52 = vpop.permute.xlu0 %161 }
 0x1d7   :  { %981 = vmatprep.subr.msk.bf16.mxu1 %vm1232_vm2, %v979_v44  ;;  %v1049_v49 = vunpack.i.h.bf16 %v1047_v48  ;;  %v1048_v50 = vunpack.i.l.bf16 %v1047_v48 }
 0x1d9   :  { %v991_v51 = vpack.c.bf16 %v1049_v49, %v1048_v50 }
 0x1da   :  { %v164_v53 = vpop.permute.xlu1 %163  ;;  %v166_v54 = vpop.permute.xlu0 %165 }
 0x1dc   :  { %984 = vmatpush3.bf16.xpose.msk.msra.mxu1 %vm1232_vm2, %v979_v44 }
 0x1dd   :  { %987 = vmatprep.subr.msk.bf16.mxu1 %vm1232_vm2, %v985_v47 }
 0x1de   :  { %v169_v55 = vpop.permute.xlu1 %168  ;;  %v171_v56 = vpop.permute.xlu0 %170 }
 0x1e2   :  { %v173_v57 = vpop.permute.xlu1 %172  ;;  %v192_v32 = vpop.permute.xlu0 %191 }
 0x1e4   :  { %990 = vmatpush3.bf16.xpose.msk.msra.mxu1 %vm1232_vm2, %v985_v47 }
 0x1e5   :  { %993 = vmatprep.subr.msk.bf16.mxu1 %vm1232_vm2, %v991_v51 }
 0x1e6   :  { %v190_v28 = vpop.permute.xlu1 %189 }
 0x1e7   :  { %v1050_v29 = vpack.i.bf16 %v190_v28, %v1218_v33 }
 0x1ec   :  { %996 = vmatpush3.bf16.xpose.msk.msra.mxu1 %vm1232_vm2, %v991_v51 }
 0x1f3   :  { %915 = vmatmul.mubr.msk.f32.vlgmr.msra.gmra.mrb[0].mxu1 %vm226_vm1, %v162_v52 }
 0x1f4   :  { %917 = vmatprep.mubr.msk.f32.mxu1 %vm226_vm1, %v164_v53 }
 0x1f7   :  { %918 = vmatmul.mubr.msk.f32.gmra.mrb[2].mxu1 %vm226_vm1, %v166_v54 }
 0x1f8   :  { %920 = vmatprep.mubr.msk.f32.mxu1 %vm226_vm1, %v137_v30  ;;  %v194_v30 = vpop.permute.xlu1 %193 }
 0x1fb   :  { %921 = vmatmul.mubr.msk.f32.gmra.mrb[4].mxu1 %vm226_vm1, %v169_v55 }
 0x1fc   :  { %923 = vmatprep.mubr.msk.f32.mxu1 %vm226_vm1, %v171_v56  ;;  %v197_v31 = vpop.permute.xlu1 %196 }
 0x1ff   :  { %924 = vmatmul.mubr.msk.f32.gmra.mrb[6].mxu1 %vm226_vm1, %v173_v57 }
 0x2c6   :  { %v916_v60 = vpop.f32.mrb[0].mxu1 }
 0x2c7   :  { %v331_v61 = vadd.f32 %v916_v60, %v203_v58  ;;  %v325_v62 = vpop.f32.mrb[1].mxu1 }
 0x2c8   :  { %v326_v63 = vadd.f32 %v325_v62, %v202_v59 }
 0x2c9   :  { %v368_v1 = vsel %vm364_vm3, %v331_v61, -inf }
 0x2ca   :  { %369 = vmax.xlane.f32.xlu1 %v368_v1  ;;  %v919_v2 = vpop.f32.mrb[2].mxu1  ;;  %v365_v3 = vsel %vm364_vm3, %v326_v63, -inf }
 0x2cb   :  { %v341_v4 = vadd.f32 %v919_v2, %v205_v0  ;;  %v335_v6 = vpop.f32.mrb[3].mxu1  ;;  %366 = vmax.xlane.f32.xlu0 %v365_v3 }
 0x2cc   :  { %v336_v11 = vadd.f32 %v335_v6, %v204_v8  ;;  %v1060_v6 = vpack.i.bf16 %v197_v31, %v1224_v34  ;;  %v1055_v8 = vpack.i.bf16 %v194_v30, %v192_v32 }
 0x2cd   :  { %v374_v10 = vsel %vm364_vm3, %v341_v4, -inf }
 0x2ce   :  { %v922_v12 = vpop.f32.mrb[4].mxu1  ;;  %v371_v19 = vsel %vm364_vm3, %v336_v11, -inf }
 0x2cf   :  { %v345_v14 = vpop.f32.mrb[5].mxu1  ;;  %375 = vmax.xlane.f32.xlu0 %v374_v10  ;;  %v351_v16 = vadd.f32 %v922_v12, %v207_v13 }
 0x2d0   :  { %v346_v15 = vadd.f32 %v345_v14, %v206_v9 }
 0x2d1   :  { %v380_v23 = vsel %vm364_vm3, %v351_v16, -inf }
 0x2d2   :  { %v925_v17 = vpop.f32.mrb[6].mxu1  ;;  %v377_v18 = vsel %vm364_vm3, %v346_v15, -inf }
 0x2d3   :  { %v355_v21 = vpop.f32.mrb[7].mxu1  ;;  %378 = vmax.xlane.f32.xlu1 %v377_v18  ;;  %372 = vmax.xlane.f32.xlu0 %v371_v19  ;;  %v361_v22 = vadd.f32 %v925_v17, %v209_v20 }
 0x2d4   :  { %v1294_v26 = vadd.f32 %v355_v21, %v208_v25 }
 0x2d5   :  { %v386_v24 = vsel %vm364_vm3, %v361_v22, -inf }
 0x2d6   :  { %v383_v27 = vsel %vm364_vm3, %v1294_v26, -inf }
 0x2d7   :  { %381 = vmax.xlane.f32.xlu0 %v380_v23 }
 0x2db   :  { %387 = vmax.xlane.f32.xlu0 %v386_v24 }
 0x2e4   :  { %200 = vrot.lane.b32.xlu1 %v1224_v34, %s1106_s1 }
 0x2f1   :  { %198 = vrot.lane.b32.xlu0 %v1224_v34, %s1108_s25  ;;  %s1112_s25 = smov 24  }
 0x308   :  { %384 = vmax.xlane.f32.xlu1 %v383_v27 }
 0x319   :  { %1051 = vrot.lane.b32.xlu1 %v1050_v29, %s1110_s19 }
 0x357   :  { %v370_v35 = vpop.xlane.xlu1 %369 }
 0x358   :  { %v390_v36 = vsub.f32 %v331_v61, %v370_v35  ;;  %v367_v37 = vpop.xlane.xlu0 %366 }
 0x359   :  { %v389_v38 = vsub.f32 %v326_v63, %v367_v37 }
 0x35a   :  { %v399_v39 = vmul.f32 1.442695, %v390_v36 }
 0x35b   :  { %v397_v40 = vmul.f32 1.442695, %v389_v38 }
 0x35c   :  { %1070 = vpow2.f32 %v399_v39  ;;  %v376_v41 = vpop.xlane.xlu0 %375 }
 0x35d   :  { %1072 = vpow2.f32 %v397_v40  ;;  %v392_v42 = vsub.f32 %v341_v4, %v376_v41 }
 0x35f   :  { %v403_v43 = vmul.f32 1.442695, %v392_v42 }
 0x360   :  { %v379_v44 = vpop.xlane.xlu1 %378  ;;  %v373_v45 = vpop.xlane.xlu0 %372 }
 0x361   :  { %1074 = vpow2.f32 %v403_v43  ;;  %v393_v33 = vsub.f32 %v346_v15, %v379_v44  ;;  %v391_v46 = vsub.f32 %v336_v11, %v373_v45 }
 0x363   :  { %v405_v47 = vmul.f32 1.442695, %v393_v33  ;;  %v401_v48 = vmul.f32 1.442695, %v391_v46 }
 0x364   :  { %v382_v49 = vpop.xlane.xlu0 %381  ;;  %v201_v9 = vpop.permute.xlu1 %200 }
 0x365   :  { %1076 = vpow2.f32 %v405_v47  ;;  %v394_v50 = vsub.f32 %v351_v16, %v382_v49 }
 0x366   :  { %v1300_v51 = vpop.eup %1070  ;;  %1078 = vpow2.f32 %v401_v48 }
 0x367   :  { %v1073_v52 = vpop.eup %1072  ;;  %v407_v53 = vmul.f32 1.442695, %v394_v50  ;;  %v416_v54 = vsel %vm364_vm3, %v1300_v51, 0.0 }
 0x368   :  { %417 = vadd.xlane.f32.xlu1 %v416_v54  ;;  %v388_v55 = vpop.xlane.xlu0 %387  ;;  %v413_v56 = vsel %vm364_vm3, %v1073_v52, 0.0 }
 0x369   :  { %1080 = vpow2.f32 %v407_v53  ;;  %v396_v57 = vsub.f32 %v361_v22, %v388_v55  ;;  %414 = vadd.xlane.f32.xlu0 %v413_v56 }
 0x36b   :  { %v1305_v58 = vpop.eup %1074  ;;  %v411_v59 = vmul.f32 1.442695, %v396_v57 }
 0x36c   :  { %v422_v60 = vsel %vm364_vm3, %v1305_v58, 0.0  ;;  %v199_v18 = vpop.permute.xlu0 %198 }
 0x36d   :  { %1082 = vpow2.f32 %v411_v59  ;;  %423 = vadd.xlane.f32.xlu0 %v422_v60  ;;  %v1065_v19 = vpack.i.bf16 %v201_v9, %v199_v18 }
 0x36f   :  { %v1309_v61 = vpop.eup %1076 }
 0x370   :  { %v1311_v62 = vpop.eup %1078  ;;  %v425_v63 = vsel %vm364_vm3, %v1309_v61, 0.0 }
 0x371   :  { %426 = vadd.xlane.f32.xlu1 %v425_v63  ;;  %v419_v0 = vsel %vm364_vm3, %v1311_v62, 0.0 }
 0x372   :  { %420 = vadd.xlane.f32.xlu0 %v419_v0 }
 0x373   :  { %v1317_v1 = vpop.eup %1080 }
 0x374   :  { %v428_v2 = vsel %vm364_vm3, %v1317_v1, 0.0 }
 0x376   :  { %429 = vadd.xlane.f32.xlu0 %v428_v2 }
 0x377   :  { %v1321_v3 = vpop.eup %1082 }
 0x378   :  { %v434_v4 = vsel %vm364_vm3, %v1321_v3, 0.0 }
 0x37a   :  { %435 = vadd.xlane.f32.xlu0 %v434_v4 }
 0x382   :  { %1061 = vrot.lane.b32.xlu1 %v1060_v6, %s1110_s19 }
 0x390   :  { %1056 = vrot.lane.b32.xlu0 %v1055_v8, %s1110_s19 }
 0x395   :  { %v385_v10 = vpop.xlane.xlu1 %384 }
 0x396   :  { %v395_v11 = vsub.f32 %v1294_v26, %v385_v10 }
 0x398   :  { %v409_v12 = vmul.f32 1.442695, %v395_v11 }
 0x399   :  { %v1052_v13 = vpop.permute.xlu1 %1051 }
 0x39a   :  { %1084 = vpow2.f32 %v409_v12  ;;  %v1054_v14 = vunpack.i.h.bf16 %v1052_v13  ;;  %v1053_v15 = vunpack.i.l.bf16 %v1052_v13 }
 0x39c   :  { %v997_v16 = vpack.c.bf16 %v1054_v14, %v1053_v15 }
 0x39e   :  { %998 = vmatprep.subr.bf16.mxu0 %v997_v16 }
 0x39f   :  { %1000 = vmatpush3.bf16.msra.mxu0 %v997_v16 }
 0x3a4   :  { %v1329_v17 = vpop.eup %1084 }
 0x3a5   :  { %v431_v34 = vsel %vm364_vm3, %v1329_v17, 0.0 }
 0x3a6   :  { %432 = vadd.xlane.f32.xlu1 %v431_v34 }
 0x3b7   :  { %1066 = vrot.lane.b32.xlu1 %v1065_v19, %s1110_s19 }
 0x3f5   :  { %v418_v22 = vpop.xlane.xlu1 %417 }
 0x3f6   :  { %v415_v20 = vpop.xlane.xlu0 %414 }
 0x3f7   :  { %1086 = vrcp.f32 %v415_v20 }
 0x3f8   :  { %1088 = vrcp.f32 %v418_v22 }
 0x3fa   :  { %v424_v21 = vpop.xlane.xlu0 %423 }
 0x3fe   :  { %v427_v26 = vpop.xlane.xlu1 %426 }
 0x3ff   :  { %v421_v23 = vpop.xlane.xlu0 %420 }
 0x400   :  { %1090 = vrcp.f32 %v421_v23 }
 0x401   :  { %v1087_v24 = vpop.eup %1086  ;;  %1092 = vrcp.f32 %v424_v21 }
 0x402   :  { %v445_v25 = vmul.f32 %v1087_v24, %v415_v20  ;;  %v1062_v32 = vpop.permute.xlu1 %1061  ;;  %1094 = vrcp.f32 %v427_v26  ;;  %v1089_v42 = vpop.eup %1088 }
 0x403   :  { %v430_v27 = vpop.xlane.xlu0 %429  ;;  %v1064_v36 = vunpack.i.h.bf16 %v1062_v32  ;;  %v1063_v37 = vunpack.i.l.bf16 %v1062_v32  ;;  %v446_v44 = vmul.f32 %v1089_v42, %v418_v22  ;;  %v663_v22 = vld [vmem:[%s1390_s6 + $0x8] sm:$0xff] }
 0x404   :  { %v453_v28 = vsub.f32 2.0, %v445_v25  ;;  %1096 = vrcp.f32 %v430_v27 }
 0x405   :  { %v1005_v41 = vpack.c.bf16 %v1064_v36, %v1063_v37  ;;  %v454_v48 = vsub.f32 2.0, %v446_v44 }
 0x406   :  { %v461_v29 = vmul.f32 %v1087_v24, %v453_v28 }
 0x407   :  { %v436_v30 = vpop.xlane.xlu0 %435  ;;  %v462_v57 = vmul.f32 %v1089_v42, %v454_v48 }
 0x408   :  { %v469_v31 = vmul.f32 %v1073_v52, %v461_v29  ;;  %1098 = vrcp.f32 %v436_v30 }
 0x409   :  { %v470_v8 = vmul.f32 %v1300_v51, %v462_v57 }
 0x40a   :  { %942 = vmatprep.mubr.msk.f32.mxu0 %vm364_vm3, %v469_v31  ;;  %v1091_v43 = vpop.eup %1090 }
 0x40b   :  { %v1057_v35 = vpop.permute.xlu0 %1056  ;;  %v1093_v45 = vpop.eup %1092  ;;  %v447_v33 = vmul.f32 %v1091_v43, %v421_v23 }
 0x40c   :  { %v1059_v38 = vunpack.i.h.bf16 %v1057_v35  ;;  %v1058_v39 = vunpack.i.l.bf16 %v1057_v35  ;;  %v1095_v47 = vpop.eup %1094  ;;  %v448_v49 = vmul.f32 %v1093_v45, %v424_v21 }
 0x40d   :  { %v449_v52 = vmul.f32 %v1095_v47, %v427_v26  ;;  %v455_v53 = vsub.f32 2.0, %v447_v33  ;;  %v830_v33 = vld [vmem:[%s1391_s7] ss:$0 sm:$0xff] }
 0x40e   :  { %v1001_v40 = vpack.c.bf16 %v1059_v38, %v1058_v39  ;;  %v1097_v50 = vpop.eup %1096  ;;  %v456_v59 = vsub.f32 2.0, %v448_v49 }
 0x40f   :  { %v450_v60 = vmul.f32 %v1097_v50, %v430_v27  ;;  %v457_v2 = vsub.f32 2.0, %v449_v52  ;;  %v463_v4 = vmul.f32 %v1091_v43, %v455_v53 }
 0x410   :  { %1002 = vmatprep.subr.bf16.mxu0 %v1001_v40  ;;  %v464_v9 = vmul.f32 %v1093_v45, %v456_v59 }
 0x411   :  { %1004 = vmatpush3.bf16.msra.mxu0 %v1001_v40  ;;  %v458_v10 = vsub.f32 2.0, %v450_v60  ;;  %v465_v12 = vmul.f32 %v1095_v47, %v457_v2  ;;  %v471_v13 = vmul.f32 %v1311_v62, %v463_v4 }
 0x412   :  { %1006 = vmatprep.subr.bf16.mxu0 %v1005_v41  ;;  %v1099_v0 = vpop.eup %1098  ;;  %v472_v16 = vmul.f32 %v1305_v58, %v464_v9 }
 0x413   :  { %v452_v11 = vmul.f32 %v1099_v0, %v436_v30  ;;  %v466_v34 = vmul.f32 %v1097_v50, %v458_v10  ;;  %v473_v19 = vmul.f32 %v1309_v61, %v465_v12  ;;  %v662_v61 = vld [vmem:[%s1390_s6] sm:$0xff] }
 0x415   :  { %1008 = vmatpush3.bf16.msra.mxu0 %v1005_v41  ;;  %v460_v18 = vsub.f32 2.0, %v452_v11  ;;  %v474_v51 = vmul.f32 %v1317_v1, %v466_v34  ;;  %v1013_v1 = vpack.c.bf16 %v663_v22, %v662_v61 }
 0x417   :  { %v468_v62 = vmul.f32 %v1099_v0, %v460_v18 }
 0x419   :  { %v476_v58 = vmul.f32 %v1321_v3, %v468_v62  ;;  %v665_v3 = vld [vmem:[%s1390_s6 + $0x18] sm:$0xff] }
 0x433   :  { %v433_v46 = vpop.xlane.xlu1 %432 }
 0x434   :  { %1100 = vrcp.f32 %v433_v46 }
 0x437   :  { %v1067_v54 = vpop.permute.xlu1 %1066 }
 0x438   :  { %v1069_v55 = vunpack.i.h.bf16 %v1067_v54  ;;  %v1068_v56 = vunpack.i.l.bf16 %v1067_v54 }
 0x43a   :  { %v1009_v63 = vpack.c.bf16 %v1069_v55, %v1068_v56 }
 0x43c   :  { %1010 = vmatprep.subr.bf16.mxu0 %v1009_v63 }
 0x43d   :  { %1012 = vmatpush3.bf16.msra.mxu0 %v1009_v63 }
 0x43e   :  { %v1101_v6 = vpop.eup %1100  ;;  %1014 = vmatprep.subr.bf16.mxu0 %v1013_v1 }
 0x43f   :  { %v451_v14 = vmul.f32 %v1101_v6, %v433_v46 }
 0x440   :  { %943 = vmatmul.mubr.msk.f32.vlgmr.msra.gmra.mrb[6].mxu0 %vm364_vm3, %v470_v8 }
 0x441   :  { %v459_v15 = vsub.f32 2.0, %v451_v14  ;;  %945 = vmatprep.mubr.msk.f32.mxu0 %vm364_vm3, %v471_v13  ;;  %1016 = vmatpush3.bf16.msra.mxu0 %v1013_v1 }
 0x443   :  { %v467_v20 = vmul.f32 %v1101_v6, %v459_v15 }
 0x444   :  { %946 = vmatmul.mubr.msk.f32.gmra.mrb[8].mxu0 %vm364_vm3, %v472_v16 }
 0x445   :  { %948 = vmatprep.mubr.msk.f32.mxu0 %vm364_vm3, %v473_v19  ;;  %v475_v21 = vmul.f32 %v1329_v17, %v467_v20  ;;  %v664_v17 = vld [vmem:[%s1390_s6 + $0x10] sm:$0xff] }
 0x446   :  { %v1017_v23 = vpack.c.bf16 %v665_v3, %v664_v17 }
 0x448   :  { %949 = vmatmul.mubr.msk.f32.gmra.mrb[10].mxu0 %vm364_vm3, %v474_v51  ;;  %1018 = vmatprep.subr.bf16.mxu0 %v1017_v23 }
 0x449   :  { %951 = vmatprep.mubr.msk.f32.mxu0 %vm364_vm3, %v475_v21  ;;  %1020 = vmatpush3.bf16.msra.mxu0 %v1017_v23 }
 0x44c   :  { %952 = vmatmul.mubr.msk.f32.gmra.mrb[12].mxu0 %vm364_vm3, %v476_v58 }
 0x513   :  { %v944_v24 = vpop.f32.mrb[6].mxu0 }
 0x514   :  { %631 = vrot.lane.b32.xlu0 %v944_v24, %s1111_s2  ;;  %v591_v25 = vpop.f32.mrb[7].mxu0 }
 0x517   :  { %v947_v26 = vpop.f32.mrb[8].mxu0 }
 0x518   :  { %639 = vrot.lane.b32.xlu1 %v947_v26, %s1112_s25  ;;  %v601_v27 = vpop.f32.mrb[9].mxu0 }
 0x51b   :  { %v950_v28 = vpop.f32.mrb[10].mxu0 }
 0x51c   :  { %635 = vrot.lane.b32.xlu1 %v601_v27, %s1113_s5  ;;  %648 = vrot.lane.b32.xlu0 %v950_v28, %s1111_s2  ;;  %v611_v29 = vpop.f32.mrb[11].mxu0 }
 0x51f   :  { %v953_v30 = vpop.f32.mrb[12].mxu0 }
 0x520   :  { %656 = vrot.lane.b32.xlu1 %v953_v30, %s1112_s25  ;;  %v621_v31 = vpop.f32.mrb[13].mxu0 }
 0x521   :  { %652 = vrot.lane.b32.xlu0 %v621_v31, %s1113_s5 }
 0x586   :  { %v632_v32 = vpop.permute.xlu0 %631 }
 0x587   :  { %v642_v36 = vsel %vm226_vm1, %v591_v25, %v632_v32 }
 0x58a   :  { %v640_v35 = vpop.permute.xlu1 %639 }
 0x58e   :  { %v636_v37 = vpop.permute.xlu1 %635  ;;  %v649_v38 = vpop.permute.xlu0 %648 }
 0x58f   :  { %v644_v39 = vsel %vm643_vm4, %v642_v36, %v636_v37  ;;  %v659_v41 = vsel %vm226_vm1, %v611_v29, %v649_v38 }
 0x590   :  { %v646_v40 = vsel %vm645_vm5, %v644_v39, %v640_v35 }
 0x591   :  { %962 = vmatprep.mubr.msk.f32.mxu0 %vm46_vm0, %v646_v40 }
 0x592   :  { %v657_v43 = vpop.permute.xlu1 %656 }
 0x593   :  { %v653_v42 = vpop.permute.xlu0 %652 }
 0x594   :  { %v660_v44 = vsel %vm643_vm4, %v659_v41, %v653_v42 }
 0x595   :  { %v661_v45 = vsel %vm645_vm5, %v660_v44, %v657_v43 }
 0x596   :  { %963 = vmatmul.mubr.msk.f32.vlgmr.msra.gmra.mrb[14].mxu0 %vm46_vm0, %v661_v45 }
 0x669   :  { %v964_v46 = vpop.f32.mrb[14].mxu0 }
 0x66a   :  { %v751_v47 = vadd.f32 %v964_v46, %v830_v33  ;;  %v745_v48 = vpop.f32.mrb[15].mxu0 }
 0x66b   :  { %v746_v49 = vadd.f32 %v830_v33, %v745_v48 }
 0x66c   :  { %v755_v50 = vadd.f32 %v751_v47, %v1182_v7 }
 0x66d   :  { %v754_v52 = vadd.f32 %v746_v49, %v1175_v5 }
 0x66e   :  { %v759_v53 = vsel %vm46_vm0, %v755_v50, 0.0 }
 0x66f   :  { %760 = vadd.xlane.f32.xlu1 %v759_v53  ;;  %v756_v54 = vsel %vm46_vm0, %v754_v52, 0.0 }
 0x670   :  { %757 = vadd.xlane.f32.xlu0 %v756_v54 }
 0x680   :  { %783 = vrot.lane.b32.xlu1 %v646_v40, %s1114_s27 }
 0x6fc   :  { %v761_v55 = vpop.xlane.xlu1 %760 }
 0x6fd   :  { %v764_v56 = vmul.f32 0.03125, %v761_v55  ;;  %v758_v57 = vpop.xlane.xlu0 %757 }
 0x6fe   :  { %v763_v59 = vmul.f32 0.03125, %v758_v57 }
 0x6ff   :  { %v766_v60 = vsub.f32 %v755_v50, %v764_v56 }
 0x700   :  { %v765_v63 = vsub.f32 %v754_v52, %v763_v59  ;;  %v784_v19 = vpop.permute.xlu1 %783 }
 0x701   :  { %v768_v0 = vmul.f32 %v766_v60, %v766_v60 }
 0x702   :  { %v767_v7 = vmul.f32 %v765_v63, %v765_v63 }
 0x703   :  { %v772_v2 = vsel %vm46_vm0, %v768_v0, 0.0 }
 0x704   :  { %773 = vadd.xlane.f32.xlu0 %v772_v2  ;;  %v769_v5 = vsel %vm46_vm0, %v767_v7, 0.0 }
 0x708   :  { %770 = vadd.xlane.f32.xlu0 %v769_v5 }
 0x71e   :  { %785 = vrot.lane.b32.xlu0 %v661_v45, %s1114_s27 }
 0x791   :  { %v774_v4 = vpop.xlane.xlu0 %773 }
 0x792   :  { %v776_v6 = vmul.f32 0.03125, %v774_v4 }
 0x794   :  { %v778_v8 = vadd.f32 1e-05, %v776_v6 }
 0x795   :  { %v771_v9 = vpop.xlane.xlu0 %770 }
 0x796   :  { %1102 = vrsqrt.f32 %v778_v8  ;;  %v775_v10 = vmul.f32 0.03125, %v771_v9 }
 0x798   :  { %v777_v11 = vadd.f32 1e-05, %v775_v10 }
 0x799   :  { %v786_v14 = vpop.permute.xlu0 %785 }
 0x79a   :  { %1104 = vrsqrt.f32 %v777_v11 }
 0x7a0   :  { %v1103_v12 = vpop.eup %1102 }
 0x7a1   :  { %v782_v13 = vmul.f32 %v1103_v12, %v766_v60 }
 0x7a3   :  { %v790_v15 = vsel %vm46_vm0, %v782_v13, %v786_v14 }
 0x7a4   :  { %v1105_v16 = vpop.eup %1104  ;;  %v792_v34 = vsel %vm364_vm3, %v790_v15, 0.0 }
 0x7a5   :  { %v781_v18 = vmul.f32 %v1105_v16, %v765_v63  ;;  %794 = vst [vmem:[%s1392_s8 + $0x8] sm:$0xff] %v792_v34 }
 0x7a7   :  { %v789_v20 = vsel %vm46_vm0, %v781_v18, %v784_v19 }
 0x7a8   :  { %v791_v51 = vsel %vm364_vm3, %v789_v20, 0.0 }
 0x7a9   :  { %793 = vst [vmem:[%s1392_s8] sm:$0xff] %v791_v51 }

</bundles_post_ra>
